<compile_context>
chip_gen: v7x
topology: tpu7x:2x2x1
jax: 0.10.0
libtpu: 0.0.40
codegen_flags: <defaults>
</compile_context>

<pallas_src>
import functools
import math

import jax
import jax.numpy as jnp
from jax import lax
from jax.experimental import pallas as pl
from jax.experimental.pallas import tpu as pltpu


# ----------------------------------------------------------------------------
# Kernel
# ----------------------------------------------------------------------------
def _fsu_add_kernel(scale, offset, acc_min, acc_max,
                    x_ref,        # (tT, N, tr, 128)  bit-stream input block
                    acc_in_ref,   # (tr, 128)         persistent acc (old state)
                    out_ref,      # (tT, tr, 128)     output bits
                    acc_out_ref): # (tr, 128)         persistent acc (new state)
    # acc_out's index_map ignores the t axis, so this block stays VMEM-resident
    # across all t grid steps of the current row block: it IS the accumulator.
    @pl.when(pl.program_id(1) == 0)
    def _():
        acc_out_ref[...] = acc_in_ref[...]

    tT = x_ref.shape[0]
    x_is_int = jnp.issubdtype(x_ref.dtype, jnp.integer)

    def cycle(j, carry):
        xj = x_ref[j]                                          # (N, tr, 128)
        if x_is_int:
            # Sum the N bit slices in int32, convert to f32 once per element.
            delta = jnp.sum(xj, axis=0, dtype=jnp.int32).astype(jnp.float32) - offset
        else:
            delta = jnp.sum(xj.astype(jnp.float32), axis=0) - offset
        acc = jnp.clip(acc_out_ref[...] + delta, acc_min, acc_max)
        bit = acc > scale
        out_ref[j] = bit.astype(out_ref.dtype)
        acc_out_ref[...] = jnp.clip(acc - bit.astype(jnp.float32) * scale,
                                    acc_min, acc_max)
        return carry

    lax.fori_loop(0, tT, cycle, 0, unroll=True)


# ----------------------------------------------------------------------------
# Generation-aware tiling helpers
# ----------------------------------------------------------------------------
def _tpu_hw():
    """Return (per-core VMEM bytes, #TensorCores sharing the grid), with safe
    fallbacks so the script runs on any backend."""
    vmem = 64 << 20          # conservative lower bound (v7x per-core VMEM)
    n_tc = 1
    try:
        info = pltpu.get_tpu_info()
        for name in ("vmem_capacity_bytes", "vmem_bytes", "vmem_size_bytes"):
            v = getattr(info, name, None)
            if v:
                vmem = int(v)
                break
        for name in ("num_cores", "cores_per_chip", "tensorcores_per_chip",
                     "num_tensorcores"):
            c = getattr(info, name, None)
            if c:
                n_tc = int(c)
                break
    except Exception:
        pass
    try:
        kind = jax.devices()[0].device_kind.lower()
        if "v7" in kind:
            n_tc = max(n_tc, 2)
            vmem = min(vmem, 64 << 20)   # v7x: 64 MiB per TC
    except Exception:
        pass
    return vmem, n_tc


def _pick_tiles(R, T, N, x_itemsize, out_itemsize, budget_bytes, n_tc):
    """Pick (tr, tT): row tile (divisor of R, sublane-aligned) and time tile
    (divisor of T) maximizing the per-grid-step block under the VMEM budget.
    On 2-TC parts keep >= 2 row blocks (when R >= 16) so the 'parallel' row
    axis shards across both cores; on 1-TC parts use the single largest tile."""
    c32 = [d for d in range(32, R + 1, 32) if R % d == 0]   # packed 8-bit tiles
    c8 = [d for d in range(8, R + 1, 8) if R % d == 0]
    row_cands = sorted(set(c32 or c8 or [R]) | {R})
    if n_tc >= 2 and R >= 16:
        multi = [d for d in row_cands if R // d >= 2]
        if multi:
            row_cands = multi
    t_cands = [d for d in range(1, T + 1) if T % d == 0]

    def footprint(tr, tT):
        x_b = 2 * tT * N * tr * 128 * x_itemsize   # double-buffered input
        o_b = 2 * tT * tr * 128 * out_itemsize     # double-buffered output
        a_b = 2 * 2 * tr * 128 * 4                 # acc in/out (conservative)
        return x_b + o_b + a_b

    best = None
    for tr in row_cands:
        for tT in t_cands:
            if footprint(tr, tT) > budget_bytes:
                continue
            key = (tr * tT, tT, tr)                # bytes/step, then T blocking
            if best is None or key > best[0]:
                best = (key, tr, tT)
    if best is None:
        # Nothing fits (extreme N): fall back to the smallest legal tile.
        return min(row_cands), 1
    return best[1], best[2]


# ----------------------------------------------------------------------------
# Stream driver
# ----------------------------------------------------------------------------
@functools.partial(jax.jit,
                   static_argnames=("scale", "offset", "depth", "out_dtype"))
def fsu_add_stream(x3d, acc_state, *, scale, offset, depth, out_dtype):
    """Run T fused FSUAdd cycles.

    x3d:       (T, N, M) bit-stream input (int8 recommended; any dtype works).
    acc_state: (Mp,) float32 persistent accumulator, Mp = ceil(M/128)*128.
    Returns (outs (T, Mp) out_dtype, new accumulator (Mp,) float32).
    """
    T, N, M = x3d.shape
    Mp = acc_state.shape[0]
    acc_max = float(2 ** (depth - 2))
    acc_min = -acc_max
    odt = jnp.dtype(out_dtype)

    if Mp != M:
        # TODO(synk): mask the ragged last lane block in-kernel instead of this
        # extra full pad/slice pass over the stream (only hit when M % 128 != 0).
        x3d = jnp.pad(x3d, ((0, 0), (0, 0), (0, Mp - M)))

    R = Mp // 128
    x4 = x3d.reshape(T, N, R, 128)
    acc2 = acc_state.reshape(R, 128)

    vmem_cap, n_tc = _tpu_hw()
    vmem_limit = min((vmem_cap * 3) // 4, 112 << 20)   # scoped limit per core
    budget = max(vmem_limit - (4 << 20), 4 << 20)      # headroom for internals
    tr, tT = _pick_tiles(R, T, N, x3d.dtype.itemsize, odt.itemsize,
                         budget, n_tc)
    n_rblk, n_tblk = R // tr, T // tT

    kernel = functools.partial(_fsu_add_kernel, float(scale), float(offset),
                               acc_min, acc_max)

    outs, acc_new = pl.pallas_call(
        kernel,
        grid=(n_rblk, n_tblk),                        # t (reduction-like) last
        in_specs=[
            pl.BlockSpec((tT, N, tr, 128), lambda r, t: (t, 0, r, 0)),   # x
            pl.BlockSpec((tr, 128),        lambda r, t: (r, 0)),         # acc in
        ],
        out_specs=[
            pl.BlockSpec((tT, tr, 128), lambda r, t: (t, r, 0)),         # out
            pl.BlockSpec((tr, 128),     lambda r, t: (r, 0)),            # acc out
        ],
        out_shape=[
            jax.ShapeDtypeStruct((T, R, 128), odt),
            jax.ShapeDtypeStruct((R, 128), jnp.float32),
        ],
        input_output_aliases={1: 1},                  # acc_state -> new acc
        compiler_params=pltpu.CompilerParams(
            dimension_semantics=("parallel", "arbitrary"),
            vmem_limit_bytes=int(vmem_limit)),
    )(x4, acc2)

    return outs.reshape(T, Mp), acc_new.reshape(Mp)


# ----------------------------------------------------------------------------
# Module wrapper (explicit state carry, PyTorch-compatible behavior)
# ----------------------------------------------------------------------------
class FSUAddPallas:
    """JAX/Pallas port of FSUAdd.  Accumulator state is carried explicitly.
    stype=jnp.int8 gives the low-HBM-traffic output path; default float32
    matches the PyTorch module's stype=torch.float."""

    def __init__(self, mode='bipolar', scaled=True, scale=None, dim=0,
                 depth=10, entry=None, stype=jnp.float32):
        self.mode = mode
        self.scaled = scaled
        self.scale = scale
        self.dim = dim
        self.depth = depth
        self.entry = entry
        self.stype = jnp.dtype(stype)
        self.first = True
        self.acc_state = None
        self._scale_f = 1.0
        self._offset_f = 0.0
        self._M = self._N = self._Mp = None
        self._out_shape = None

    def _setup(self, N, out_shape, M, scale_arg, entry_arg):
        # Per-call scale/entry only affect the first call (matches PyTorch).
        if self.scaled:
            sc = float(N) if self.scale is None else float(self.scale)
            if scale_arg is not None:
                sc = float(scale_arg)
            self._scale_f = sc
        else:
            self._scale_f = 1.0
        if self.mode == 'bipolar':
            base = float(N) if self.entry is None else float(self.entry)
            if entry_arg is not None:
                base = float(entry_arg)
            self._offset_f = (base - self._scale_f) / 2.0
        else:
            self._offset_f = 0.0
        Mp = ((M + 127) // 128) * 128
        self._M, self._N, self._Mp = M, N, Mp
        self._out_shape = tuple(out_shape)
        self.acc_state = jnp.zeros((Mp,), jnp.float32)

    def forward_stream(self, x_stream, scale=None, entry=None):
        """Process a whole bit stream at once: x_stream = (T,) + input_shape."""
        ndim_in = x_stream.ndim - 1
        d = self.dim if self.dim >= 0 else ndim_in + self.dim
        x = jnp.moveaxis(x_stream, d + 1, 1)          # (T, N, ...)
        T, N = x.shape[0], x.shape[1]
        out_shape = x.shape[2:]
        M = int(math.prod(out_shape)) if out_shape else 1
        x3d = x.reshape(T, N, M)
        if x3d.dtype == jnp.bool_:
            x3d = x3d.astype(jnp.int8)

        if self.first:
            self._setup(N, out_shape, M, scale, entry)
            self.first = False
        elif (N, M) != (self._N, self._M):
            raise ValueError(
                "FSUAddPallas: input shape changed after first call "
                f"(got N={N}, M={M}; expected N={self._N}, M={self._M})")

        outs, self.acc_state = fsu_add_stream(
            x3d, self.acc_state,
            scale=self._scale_f, offset=self._offset_f, depth=self.depth,
            out_dtype=self.stype.name)
        if self._Mp != self._M:
            outs = outs[:, :self._M]
        return outs.reshape((T,) + self._out_shape)

    def __call__(self, x, scale=None, entry=None):
        """Single-cycle stateful forward (matches the PyTorch call pattern)."""
        return self.forward_stream(x[jnp.newaxis], scale=scale, entry=entry)[0]


# ----------------------------------------------------------------------------
# Demo / self-test
# ----------------------------------------------------------------------------
if __name__ == "__main__":
    key = jax.random.PRNGKey(0)
    N, C, H, W = 2, 4, 16, 16   # input: (N, C, H, W), reduction over dim=0
    T = 8                       # stochastic bit-stream length
    M = C * H * W

    module = FSUAddPallas(mode='bipolar', scaled=True, scale=None, dim=0,
                          depth=10)

    # Stochastic bit streams as int8 {0,1} (4x less HBM read traffic than f32).
    key, sub = jax.random.split(key)
    x_stream = jax.random.bernoulli(
        sub, p=0.7, shape=(T, N, C, H, W)).astype(jnp.int8)

    outs = module.forward_stream(x_stream)          # (T, C, H, W) float32
    outs = jax.block_until_ready(outs)

    # Pure-JAX reference mirroring the PyTorch module.
    acc_max = 2.0 ** (10 - 2)
    ref_scale = float(N)
    ref_offset = (N - ref_scale) / 2.0
    ref_acc = jnp.zeros((M,), jnp.float32)
    ref_outs = []
    for t in range(T):
        x2d = x_stream[t].reshape(N, M).astype(jnp.float32)
        delta = jnp.sum(x2d, axis=0) - ref_offset
        ref_acc = jnp.clip(ref_acc + delta, -acc_max, acc_max)
        o = (ref_acc > ref_scale).astype(jnp.float32)
        ref_acc = jnp.clip(ref_acc - o * ref_scale, -acc_max, acc_max)
        ref_outs.append(o.reshape(C, H, W))
    ref_outs = jnp.stack(ref_outs)

    assert outs.shape == (T, C, H, W)
    assert outs.dtype == jnp.float32
    assert bool(jnp.all(outs == ref_outs)), "fused-stream output mismatch"
    assert bool(jnp.all(module.acc_state[:M] == ref_acc)), "accumulator mismatch"

    # Low-traffic int8 output path (same bits, 4x fewer output bytes).
    module_i8 = FSUAddPallas(mode='bipolar', scaled=True, scale=None, dim=0,
                             depth=10, stype=jnp.int8)
    outs_i8 = jax.block_until_ready(module_i8.forward_stream(x_stream))
    assert outs_i8.dtype == jnp.int8
    assert bool(jnp.all(outs_i8.astype(jnp.float32) == ref_outs)), \
        "int8-output mismatch"

    # Single-cycle stateful path, continuing from the fused-stream state.
    key, sub = jax.random.split(key)
    x_one = jax.random.bernoulli(sub, p=0.3, shape=(N, C, H, W)).astype(jnp.int8)
    out_one = jax.block_until_ready(module(x_one))

    x2d = x_one.reshape(N, M).astype(jnp.float32)
    delta = jnp.sum(x2d, axis=0) - ref_offset
    ref_acc = jnp.clip(ref_acc + delta, -acc_max, acc_max)
    ref_one = (ref_acc > ref_scale).astype(jnp.float32)
    ref_acc = jnp.clip(ref_acc - ref_one * ref_scale, -acc_max, acc_max)

    assert out_one.shape == (C, H, W)
    assert bool(jnp.all(out_one == ref_one.reshape(C, H, W))), \
        "single-cycle output mismatch"
    assert bool(jnp.all(module.acc_state[:M] == ref_acc)), \
        "single-cycle accumulator mismatch"

    print("KERNEL_OK")
</pallas_src>

<mosaic_0001>
module attributes {stable_mosaic.version = 11 : i64} {
  func.func @_fsu_add_kernel(%arg0: i32, %arg1: i32, %arg2: memref<8x2x8x128xi8, #tpu.memory_space<vmem>>, %arg3: memref<8x128xf32, #tpu.memory_space<vmem>>, %arg4: memref<8x8x128xf32, #tpu.memory_space<vmem>>, %arg5: memref<8x128xf32, #tpu.memory_space<vmem>>) attributes {dimension_semantics = [#tpu.dimension_semantics<parallel>, #tpu.dimension_semantics<arbitrary>], iteration_bounds = array<i64: 1, 1>, scalar_prefetch = 0 : i64, scratch_operands = 0 : i64, tpu.core_type = #tpu.core_type<tc>, window_params = [{transform_indices = @transform_0, window_bounds = array<i64: 8, 2, 8, 128>}, {transform_indices = @transform_1, window_bounds = array<i64: 8, 128>}, {transform_indices = @transform_2, window_bounds = array<i64: 8, 8, 128>}, {transform_indices = @transform_3, window_bounds = array<i64: 8, 128>}]} {
    %c0_i32 = arith.constant 0 : i32
    %0 = arith.cmpi eq, %arg1, %c0_i32 : i32
    %1 = arith.extui %0 : i1 to i32
    %c0_i32_0 = arith.constant 0 : i32
    %2 = arith.cmpi ne, %1, %c0_i32_0 : i32
    scf.if %2 {
      %c0_136 = arith.constant 0 : index
      %c0_137 = arith.constant 0 : index
      %259 = vector.load %arg3[%c0_136, %c0_137] : memref<8x128xf32, #tpu.memory_space<vmem>>, vector<8x128xf32>
      %c0_138 = arith.constant 0 : index
      %c0_139 = arith.constant 0 : index
      %260 = vector.load %arg5[%c0_138, %c0_139] : memref<8x128xf32, #tpu.memory_space<vmem>>, vector<8x128xf32>
      tpu.vector_store %arg5[%c0_138, %c0_139], %259 {strides = array<i32>} : memref<8x128xf32, #tpu.memory_space<vmem>>, vector<8x128xf32>,
    } else {
    }
    %c0_i32_1 = arith.constant 0 : i32
    %3 = arith.index_cast %c0_i32_1 : i32 to index
    %c0 = arith.constant 0 : index
    %c0_2 = arith.constant 0 : index
    %c0_3 = arith.constant 0 : index
    %4 = vector.load %arg2[%3, %c0, %c0_2, %c0_3] : memref<8x2x8x128xi8, #tpu.memory_space<vmem>>, vector<1x2x8x128xi8>
    %5 = vector.shape_cast %4 : vector<1x2x8x128xi8> to vector<2x8x128xi8>
    %6 = arith.extsi %5 : vector<2x8x128xi8> to vector<2x8x128xi32>
    %cst = arith.constant dense<0> : vector<8x128xi32>
    %7 = vector.multi_reduction <add>, %6, %cst [0] : vector<2x8x128xi32> to vector<8x128xi32>
    %8 = arith.sitofp %7 : vector<8x128xi32> to vector<8x128xf32>
    %cst_4 = arith.constant 0.000000e+00 : f32
    %9 = vector.broadcast %cst_4 : f32 to vector<8x128xf32>
    %10 = arith.subf %8, %9 : vector<8x128xf32>
    %c0_5 = arith.constant 0 : index
    %c0_6 = arith.constant 0 : index
    %11 = vector.load %arg5[%c0_5, %c0_6] : memref<8x128xf32, #tpu.memory_space<vmem>>, vector<8x128xf32>
    %12 = arith.addf %11, %10 : vector<8x128xf32>
    %cst_7 = arith.constant -2.560000e+02 : f32
    %cst_8 = arith.constant 2.560000e+02 : f32
    %13 = vector.broadcast %cst_7 : f32 to vector<8x128xf32>
    %14 = arith.maximumf %13, %12 : vector<8x128xf32>
    %15 = vector.broadcast %cst_8 : f32 to vector<8x128xf32>
    %16 = arith.minimumf %15, %14 : vector<8x128xf32>
    %cst_9 = arith.constant 2.000000e+00 : f32
    %17 = vector.broadcast %cst_9 : f32 to vector<8x128xf32>
    %18 = arith.cmpf ogt, %16, %17 : vector<8x128xf32>
    %19 = arith.extui %18 : vector<8x128xi1> to vector<8x128xi32>
    %20 = arith.sitofp %19 : vector<8x128xi32> to vector<8x128xf32>
    %21 = arith.index_cast %c0_i32_1 : i32 to index
    %c0_10 = arith.constant 0 : index
    %c0_11 = arith.constant 0 : index
    %22 = vector.load %arg4[%21, %c0_10, %c0_11] : memref<8x8x128xf32, #tpu.memory_space<vmem>>, vector<1x8x128xf32>
    %23 = vector.shape_cast %22 : vector<1x8x128xf32> to vector<8x128xf32>
    %24 = vector.shape_cast %20 : vector<8x128xf32> to vector<1x8x128xf32>
    tpu.vector_store %arg4[%21, %c0_10, %c0_11], %24 {strides = array<i32>} : memref<8x8x128xf32, #tpu.memory_space<vmem>>, vector<1x8x128xf32>,
    %25 = arith.extui %18 : vector<8x128xi1> to vector<8x128xi32>
    %26 = arith.sitofp %25 : vector<8x128xi32> to vector<8x128xf32>
    %cst_12 = arith.constant 2.000000e+00 : f32
    %27 = vector.broadcast %cst_12 : f32 to vector<8x128xf32>
    %28 = arith.mulf %26, %27 : vector<8x128xf32>
    %29 = arith.subf %16, %28 : vector<8x128xf32>
    %cst_13 = arith.constant -2.560000e+02 : f32
    %cst_14 = arith.constant 2.560000e+02 : f32
    %30 = vector.broadcast %cst_13 : f32 to vector<8x128xf32>
    %31 = arith.maximumf %30, %29 : vector<8x128xf32>
    %32 = vector.broadcast %cst_14 : f32 to vector<8x128xf32>
    %33 = arith.minimumf %32, %31 : vector<8x128xf32>
    %c0_15 = arith.constant 0 : index
    %c0_16 = arith.constant 0 : index
    %34 = vector.load %arg5[%c0_15, %c0_16] : memref<8x128xf32, #tpu.memory_space<vmem>>, vector<8x128xf32>
    tpu.vector_store %arg5[%c0_15, %c0_16], %33 {strides = array<i32>} : memref<8x128xf32, #tpu.memory_space<vmem>>, vector<8x128xf32>,
    %c1_i32 = arith.constant 1 : i32
    %35 = arith.index_cast %c1_i32 : i32 to index
    %c0_17 = arith.constant 0 : index
    %c0_18 = arith.constant 0 : index
    %c0_19 = arith.constant 0 : index
    %36 = vector.load %arg2[%35, %c0_17, %c0_18, %c0_19] : memref<8x2x8x128xi8, #tpu.memory_space<vmem>>, vector<1x2x8x128xi8>
    %37 = vector.shape_cast %36 : vector<1x2x8x128xi8> to vector<2x8x128xi8>
    %38 = arith.extsi %37 : vector<2x8x128xi8> to vector<2x8x128xi32>
    %cst_20 = arith.constant dense<0> : vector<8x128xi32>
    %39 = vector.multi_reduction <add>, %38, %cst_20 [0] : vector<2x8x128xi32> to vector<8x128xi32>
    %40 = arith.sitofp %39 : vector<8x128xi32> to vector<8x128xf32>
    %cst_21 = arith.constant 0.000000e+00 : f32
    %41 = vector.broadcast %cst_21 : f32 to vector<8x128xf32>
    %42 = arith.subf %40, %41 : vector<8x128xf32>
    %c0_22 = arith.constant 0 : index
    %c0_23 = arith.constant 0 : index
    %43 = vector.load %arg5[%c0_22, %c0_23] : memref<8x128xf32, #tpu.memory_space<vmem>>, vector<8x128xf32>
    %44 = arith.addf %43, %42 : vector<8x128xf32>
    %cst_24 = arith.constant -2.560000e+02 : f32
    %cst_25 = arith.constant 2.560000e+02 : f32
    %45 = vector.broadcast %cst_24 : f32 to vector<8x128xf32>
    %46 = arith.maximumf %45, %44 : vector<8x128xf32>
    %47 = vector.broadcast %cst_25 : f32 to vector<8x128xf32>
    %48 = arith.minimumf %47, %46 : vector<8x128xf32>
    %cst_26 = arith.constant 2.000000e+00 : f32
    %49 = vector.broadcast %cst_26 : f32 to vector<8x128xf32>
    %50 = arith.cmpf ogt, %48, %49 : vector<8x128xf32>
    %51 = arith.extui %50 : vector<8x128xi1> to vector<8x128xi32>
    %52 = arith.sitofp %51 : vector<8x128xi32> to vector<8x128xf32>
    %53 = arith.index_cast %c1_i32 : i32 to index
    %c0_27 = arith.constant 0 : index
    %c0_28 = arith.constant 0 : index
    %54 = vector.load %arg4[%53, %c0_27, %c0_28] : memref<8x8x128xf32, #tpu.memory_space<vmem>>, vector<1x8x128xf32>
    %55 = vector.shape_cast %54 : vector<1x8x128xf32> to vector<8x128xf32>
    %56 = vector.shape_cast %52 : vector<8x128xf32> to vector<1x8x128xf32>
    tpu.vector_store %arg4[%53, %c0_27, %c0_28], %56 {strides = array<i32>} : memref<8x8x128xf32, #tpu.memory_space<vmem>>, vector<1x8x128xf32>,
    %57 = arith.extui %50 : vector<8x128xi1> to vector<8x128xi32>
    %58 = arith.sitofp %57 : vector<8x128xi32> to vector<8x128xf32>
    %cst_29 = arith.constant 2.000000e+00 : f32
    %59 = vector.broadcast %cst_29 : f32 to vector<8x128xf32>
    %60 = arith.mulf %58, %59 : vector<8x128xf32>
    %61 = arith.subf %48, %60 : vector<8x128xf32>
    %cst_30 = arith.constant -2.560000e+02 : f32
    %cst_31 = arith.constant 2.560000e+02 : f32
    %62 = vector.broadcast %cst_30 : f32 to vector<8x128xf32>
    %63 = arith.maximumf %62, %61 : vector<8x128xf32>
    %64 = vector.broadcast %cst_31 : f32 to vector<8x128xf32>
    %65 = arith.minimumf %64, %63 : vector<8x128xf32>
    %c0_32 = arith.constant 0 : index
    %c0_33 = arith.constant 0 : index
    %66 = vector.load %arg5[%c0_32, %c0_33] : memref<8x128xf32, #tpu.memory_space<vmem>>, vector<8x128xf32>
    tpu.vector_store %arg5[%c0_32, %c0_33], %65 {strides = array<i32>} : memref<8x128xf32, #tpu.memory_space<vmem>>, vector<8x128xf32>,
    %c2_i32 = arith.constant 2 : i32
    %67 = arith.index_cast %c2_i32 : i32 to index
    %c0_34 = arith.constant 0 : index
    %c0_35 = arith.constant 0 : index
    %c0_36 = arith.constant 0 : index
    %68 = vector.load %arg2[%67, %c0_34, %c0_35, %c0_36] : memref<8x2x8x128xi8, #tpu.memory_space<vmem>>, vector<1x2x8x128xi8>
    %69 = vector.shape_cast %68 : vector<1x2x8x128xi8> to vector<2x8x128xi8>
    %70 = arith.extsi %69 : vector<2x8x128xi8> to vector<2x8x128xi32>
    %cst_37 = arith.constant dense<0> : vector<8x128xi32>
    %71 = vector.multi_reduction <add>, %70, %cst_37 [0] : vector<2x8x128xi32> to vector<8x128xi32>
    %72 = arith.sitofp %71 : vector<8x128xi32> to vector<8x128xf32>
    %cst_38 = arith.constant 0.000000e+00 : f32
    %73 = vector.broadcast %cst_38 : f32 to vector<8x128xf32>
    %74 = arith.subf %72, %73 : vector<8x128xf32>
    %c0_39 = arith.constant 0 : index
    %c0_40 = arith.constant 0 : index
    %75 = vector.load %arg5[%c0_39, %c0_40] : memref<8x128xf32, #tpu.memory_space<vmem>>, vector<8x128xf32>
    %76 = arith.addf %75, %74 : vector<8x128xf32>
    %cst_41 = arith.constant -2.560000e+02 : f32
    %cst_42 = arith.constant 2.560000e+02 : f32
    %77 = vector.broadcast %cst_41 : f32 to vector<8x128xf32>
    %78 = arith.maximumf %77, %76 : vector<8x128xf32>
    %79 = vector.broadcast %cst_42 : f32 to vector<8x128xf32>
    %80 = arith.minimumf %79, %78 : vector<8x128xf32>
    %cst_43 = arith.constant 2.000000e+00 : f32
    %81 = vector.broadcast %cst_43 : f32 to vector<8x128xf32>
    %82 = arith.cmpf ogt, %80, %81 : vector<8x128xf32>
    %83 = arith.extui %82 : vector<8x128xi1> to vector<8x128xi32>
    %84 = arith.sitofp %83 : vector<8x128xi32> to vector<8x128xf32>
    %85 = arith.index_cast %c2_i32 : i32 to index
    %c0_44 = arith.constant 0 : index
    %c0_45 = arith.constant 0 : index
    %86 = vector.load %arg4[%85, %c0_44, %c0_45] : memref<8x8x128xf32, #tpu.memory_space<vmem>>, vector<1x8x128xf32>
    %87 = vector.shape_cast %86 : vector<1x8x128xf32> to vector<8x128xf32>
    %88 = vector.shape_cast %84 : vector<8x128xf32> to vector<1x8x128xf32>
    tpu.vector_store %arg4[%85, %c0_44, %c0_45], %88 {strides = array<i32>} : memref<8x8x128xf32, #tpu.memory_space<vmem>>, vector<1x8x128xf32>,
    %89 = arith.extui %82 : vector<8x128xi1> to vector<8x128xi32>
    %90 = arith.sitofp %89 : vector<8x128xi32> to vector<8x128xf32>
    %cst_46 = arith.constant 2.000000e+00 : f32
    %91 = vector.broadcast %cst_46 : f32 to vector<8x128xf32>
    %92 = arith.mulf %90, %91 : vector<8x128xf32>
    %93 = arith.subf %80, %92 : vector<8x128xf32>
    %cst_47 = arith.constant -2.560000e+02 : f32
    %cst_48 = arith.constant 2.560000e+02 : f32
    %94 = vector.broadcast %cst_47 : f32 to vector<8x128xf32>
    %95 = arith.maximumf %94, %93 : vector<8x128xf32>
    %96 = vector.broadcast %cst_48 : f32 to vector<8x128xf32>
    %97 = arith.minimumf %96, %95 : vector<8x128xf32>
    %c0_49 = arith.constant 0 : index
    %c0_50 = arith.constant 0 : index
    %98 = vector.load %arg5[%c0_49, %c0_50] : memref<8x128xf32, #tpu.memory_space<vmem>>, vector<8x128xf32>
    tpu.vector_store %arg5[%c0_49, %c0_50], %97 {strides = array<i32>} : memref<8x128xf32, #tpu.memory_space<vmem>>, vector<8x128xf32>,
    %c3_i32 = arith.constant 3 : i32
    %99 = arith.index_cast %c3_i32 : i32 to index
    %c0_51 = arith.constant 0 : index
    %c0_52 = arith.constant 0 : index
    %c0_53 = arith.constant 0 : index
    %100 = vector.load %arg2[%99, %c0_51, %c0_52, %c0_53] : memref<8x2x8x128xi8, #tpu.memory_space<vmem>>, vector<1x2x8x128xi8>
    %101 = vector.shape_cast %100 : vector<1x2x8x128xi8> to vector<2x8x128xi8>
    %102 = arith.extsi %101 : vector<2x8x128xi8> to vector<2x8x128xi32>
    %cst_54 = arith.constant dense<0> : vector<8x128xi32>
    %103 = vector.multi_reduction <add>, %102, %cst_54 [0] : vector<2x8x128xi32> to vector<8x128xi32>
    %104 = arith.sitofp %103 : vector<8x128xi32> to vector<8x128xf32>
    %cst_55 = arith.constant 0.000000e+00 : f32
    %105 = vector.broadcast %cst_55 : f32 to vector<8x128xf32>
    %106 = arith.subf %104, %105 : vector<8x128xf32>
    %c0_56 = arith.constant 0 : index
    %c0_57 = arith.constant 0 : index
    %107 = vector.load %arg5[%c0_56, %c0_57] : memref<8x128xf32, #tpu.memory_space<vmem>>, vector<8x128xf32>
    %108 = arith.addf %107, %106 : vector<8x128xf32>
    %cst_58 = arith.constant -2.560000e+02 : f32
    %cst_59 = arith.constant 2.560000e+02 : f32
    %109 = vector.broadcast %cst_58 : f32 to vector<8x128xf32>
    %110 = arith.maximumf %109, %108 : vector<8x128xf32>
    %111 = vector.broadcast %cst_59 : f32 to vector<8x128xf32>
    %112 = arith.minimumf %111, %110 : vector<8x128xf32>
    %cst_60 = arith.constant 2.000000e+00 : f32
    %113 = vector.broadcast %cst_60 : f32 to vector<8x128xf32>
    %114 = arith.cmpf ogt, %112, %113 : vector<8x128xf32>
    %115 = arith.extui %114 : vector<8x128xi1> to vector<8x128xi32>
    %116 = arith.sitofp %115 : vector<8x128xi32> to vector<8x128xf32>
    %117 = arith.index_cast %c3_i32 : i32 to index
    %c0_61 = arith.constant 0 : index
    %c0_62 = arith.constant 0 : index
    %118 = vector.load %arg4[%117, %c0_61, %c0_62] : memref<8x8x128xf32, #tpu.memory_space<vmem>>, vector<1x8x128xf32>
    %119 = vector.shape_cast %118 : vector<1x8x128xf32> to vector<8x128xf32>
    %120 = vector.shape_cast %116 : vector<8x128xf32> to vector<1x8x128xf32>
    tpu.vector_store %arg4[%117, %c0_61, %c0_62], %120 {strides = array<i32>} : memref<8x8x128xf32, #tpu.memory_space<vmem>>, vector<1x8x128xf32>,
    %121 = arith.extui %114 : vector<8x128xi1> to vector<8x128xi32>
    %122 = arith.sitofp %121 : vector<8x128xi32> to vector<8x128xf32>
    %cst_63 = arith.constant 2.000000e+00 : f32
    %123 = vector.broadcast %cst_63 : f32 to vector<8x128xf32>
    %124 = arith.mulf %122, %123 : vector<8x128xf32>
    %125 = arith.subf %112, %124 : vector<8x128xf32>
    %cst_64 = arith.constant -2.560000e+02 : f32
    %cst_65 = arith.constant 2.560000e+02 : f32
    %126 = vector.broadcast %cst_64 : f32 to vector<8x128xf32>
    %127 = arith.maximumf %126, %125 : vector<8x128xf32>
    %128 = vector.broadcast %cst_65 : f32 to vector<8x128xf32>
    %129 = arith.minimumf %128, %127 : vector<8x128xf32>
    %c0_66 = arith.constant 0 : index
    %c0_67 = arith.constant 0 : index
    %130 = vector.load %arg5[%c0_66, %c0_67] : memref<8x128xf32, #tpu.memory_space<vmem>>, vector<8x128xf32>
    tpu.vector_store %arg5[%c0_66, %c0_67], %129 {strides = array<i32>} : memref<8x128xf32, #tpu.memory_space<vmem>>, vector<8x128xf32>,
    %c4_i32 = arith.constant 4 : i32
    %131 = arith.index_cast %c4_i32 : i32 to index
    %c0_68 = arith.constant 0 : index
    %c0_69 = arith.constant 0 : index
    %c0_70 = arith.constant 0 : index
    %132 = vector.load %arg2[%131, %c0_68, %c0_69, %c0_70] : memref<8x2x8x128xi8, #tpu.memory_space<vmem>>, vector<1x2x8x128xi8>
    %133 = vector.shape_cast %132 : vector<1x2x8x128xi8> to vector<2x8x128xi8>
    %134 = arith.extsi %133 : vector<2x8x128xi8> to vector<2x8x128xi32>
    %cst_71 = arith.constant dense<0> : vector<8x128xi32>
    %135 = vector.multi_reduction <add>, %134, %cst_71 [0] : vector<2x8x128xi32> to vector<8x128xi32>
    %136 = arith.sitofp %135 : vector<8x128xi32> to vector<8x128xf32>
    %cst_72 = arith.constant 0.000000e+00 : f32
    %137 = vector.broadcast %cst_72 : f32 to vector<8x128xf32>
    %138 = arith.subf %136, %137 : vector<8x128xf32>
    %c0_73 = arith.constant 0 : index
    %c0_74 = arith.constant 0 : index
    %139 = vector.load %arg5[%c0_73, %c0_74] : memref<8x128xf32, #tpu.memory_space<vmem>>, vector<8x128xf32>
    %140 = arith.addf %139, %138 : vector<8x128xf32>
    %cst_75 = arith.constant -2.560000e+02 : f32
    %cst_76 = arith.constant 2.560000e+02 : f32
    %141 = vector.broadcast %cst_75 : f32 to vector<8x128xf32>
    %142 = arith.maximumf %141, %140 : vector<8x128xf32>
    %143 = vector.broadcast %cst_76 : f32 to vector<8x128xf32>
    %144 = arith.minimumf %143, %142 : vector<8x128xf32>
    %cst_77 = arith.constant 2.000000e+00 : f32
    %145 = vector.broadcast %cst_77 : f32 to vector<8x128xf32>
    %146 = arith.cmpf ogt, %144, %145 : vector<8x128xf32>
    %147 = arith.extui %146 : vector<8x128xi1> to vector<8x128xi32>
    %148 = arith.sitofp %147 : vector<8x128xi32> to vector<8x128xf32>
    %149 = arith.index_cast %c4_i32 : i32 to index
    %c0_78 = arith.constant 0 : index
    %c0_79 = arith.constant 0 : index
    %150 = vector.load %arg4[%149, %c0_78, %c0_79] : memref<8x8x128xf32, #tpu.memory_space<vmem>>, vector<1x8x128xf32>
    %151 = vector.shape_cast %150 : vector<1x8x128xf32> to vector<8x128xf32>
    %152 = vector.shape_cast %148 : vector<8x128xf32> to vector<1x8x128xf32>
    tpu.vector_store %arg4[%149, %c0_78, %c0_79], %152 {strides = array<i32>} : memref<8x8x128xf32, #tpu.memory_space<vmem>>, vector<1x8x128xf32>,
    %153 = arith.extui %146 : vector<8x128xi1> to vector<8x128xi32>
    %154 = arith.sitofp %153 : vector<8x128xi32> to vector<8x128xf32>
    %cst_80 = arith.constant 2.000000e+00 : f32
    %155 = vector.broadcast %cst_80 : f32 to vector<8x128xf32>
    %156 = arith.mulf %154, %155 : vector<8x128xf32>
    %157 = arith.subf %144, %156 : vector<8x128xf32>
    %cst_81 = arith.constant -2.560000e+02 : f32
    %cst_82 = arith.constant 2.560000e+02 : f32
    %158 = vector.broadcast %cst_81 : f32 to vector<8x128xf32>
    %159 = arith.maximumf %158, %157 : vector<8x128xf32>
    %160 = vector.broadcast %cst_82 : f32 to vector<8x128xf32>
    %161 = arith.minimumf %160, %159 : vector<8x128xf32>
    %c0_83 = arith.constant 0 : index
    %c0_84 = arith.constant 0 : index
    %162 = vector.load %arg5[%c0_83, %c0_84] : memref<8x128xf32, #tpu.memory_space<vmem>>, vector<8x128xf32>
    tpu.vector_store %arg5[%c0_83, %c0_84], %161 {strides = array<i32>} : memref<8x128xf32, #tpu.memory_space<vmem>>, vector<8x128xf32>,
    %c5_i32 = arith.constant 5 : i32
    %163 = arith.index_cast %c5_i32 : i32 to index
    %c0_85 = arith.constant 0 : index
    %c0_86 = arith.constant 0 : index
    %c0_87 = arith.constant 0 : index
    %164 = vector.load %arg2[%163, %c0_85, %c0_86, %c0_87] : memref<8x2x8x128xi8, #tpu.memory_space<vmem>>, vector<1x2x8x128xi8>
    %165 = vector.shape_cast %164 : vector<1x2x8x128xi8> to vector<2x8x128xi8>
    %166 = arith.extsi %165 : vector<2x8x128xi8> to vector<2x8x128xi32>
    %cst_88 = arith.constant dense<0> : vector<8x128xi32>
    %167 = vector.multi_reduction <add>, %166, %cst_88 [0] : vector<2x8x128xi32> to vector<8x128xi32>
    %168 = arith.sitofp %167 : vector<8x128xi32> to vector<8x128xf32>
    %cst_89 = arith.constant 0.000000e+00 : f32
    %169 = vector.broadcast %cst_89 : f32 to vector<8x128xf32>
    %170 = arith.subf %168, %169 : vector<8x128xf32>
    %c0_90 = arith.constant 0 : index
    %c0_91 = arith.constant 0 : index
    %171 = vector.load %arg5[%c0_90, %c0_91] : memref<8x128xf32, #tpu.memory_space<vmem>>, vector<8x128xf32>
    %172 = arith.addf %171, %170 : vector<8x128xf32>
    %cst_92 = arith.constant -2.560000e+02 : f32
    %cst_93 = arith.constant 2.560000e+02 : f32
    %173 = vector.broadcast %cst_92 : f32 to vector<8x128xf32>
    %174 = arith.maximumf %173, %172 : vector<8x128xf32>
    %175 = vector.broadcast %cst_93 : f32 to vector<8x128xf32>
    %176 = arith.minimumf %175, %174 : vector<8x128xf32>
    %cst_94 = arith.constant 2.000000e+00 : f32
    %177 = vector.broadcast %cst_94 : f32 to vector<8x128xf32>
    %178 = arith.cmpf ogt, %176, %177 : vector<8x128xf32>
    %179 = arith.extui %178 : vector<8x128xi1> to vector<8x128xi32>
    %180 = arith.sitofp %179 : vector<8x128xi32> to vector<8x128xf32>
    %181 = arith.index_cast %c5_i32 : i32 to index
    %c0_95 = arith.constant 0 : index
    %c0_96 = arith.constant 0 : index
    %182 = vector.load %arg4[%181, %c0_95, %c0_96] : memref<8x8x128xf32, #tpu.memory_space<vmem>>, vector<1x8x128xf32>
    %183 = vector.shape_cast %182 : vector<1x8x128xf32> to vector<8x128xf32>
    %184 = vector.shape_cast %180 : vector<8x128xf32> to vector<1x8x128xf32>
    tpu.vector_store %arg4[%181, %c0_95, %c0_96], %184 {strides = array<i32>} : memref<8x8x128xf32, #tpu.memory_space<vmem>>, vector<1x8x128xf32>,
    %185 = arith.extui %178 : vector<8x128xi1> to vector<8x128xi32>
    %186 = arith.sitofp %185 : vector<8x128xi32> to vector<8x128xf32>
    %cst_97 = arith.constant 2.000000e+00 : f32
    %187 = vector.broadcast %cst_97 : f32 to vector<8x128xf32>
    %188 = arith.mulf %186, %187 : vector<8x128xf32>
    %189 = arith.subf %176, %188 : vector<8x128xf32>
    %cst_98 = arith.constant -2.560000e+02 : f32
    %cst_99 = arith.constant 2.560000e+02 : f32
    %190 = vector.broadcast %cst_98 : f32 to vector<8x128xf32>
    %191 = arith.maximumf %190, %189 : vector<8x128xf32>
    %192 = vector.broadcast %cst_99 : f32 to vector<8x128xf32>
    %193 = arith.minimumf %192, %191 : vector<8x128xf32>
    %c0_100 = arith.constant 0 : index
    %c0_101 = arith.constant 0 : index
    %194 = vector.load %arg5[%c0_100, %c0_101] : memref<8x128xf32, #tpu.memory_space<vmem>>, vector<8x128xf32>
    tpu.vector_store %arg5[%c0_100, %c0_101], %193 {strides = array<i32>} : memref<8x128xf32, #tpu.memory_space<vmem>>, vector<8x128xf32>,
    %c6_i32 = arith.constant 6 : i32
    %195 = arith.index_cast %c6_i32 : i32 to index
    %c0_102 = arith.constant 0 : index
    %c0_103 = arith.constant 0 : index
    %c0_104 = arith.constant 0 : index
    %196 = vector.load %arg2[%195, %c0_102, %c0_103, %c0_104] : memref<8x2x8x128xi8, #tpu.memory_space<vmem>>, vector<1x2x8x128xi8>
    %197 = vector.shape_cast %196 : vector<1x2x8x128xi8> to vector<2x8x128xi8>
    %198 = arith.extsi %197 : vector<2x8x128xi8> to vector<2x8x128xi32>
    %cst_105 = arith.constant dense<0> : vector<8x128xi32>
    %199 = vector.multi_reduction <add>, %198, %cst_105 [0] : vector<2x8x128xi32> to vector<8x128xi32>
    %200 = arith.sitofp %199 : vector<8x128xi32> to vector<8x128xf32>
    %cst_106 = arith.constant 0.000000e+00 : f32
    %201 = vector.broadcast %cst_106 : f32 to vector<8x128xf32>
    %202 = arith.subf %200, %201 : vector<8x128xf32>
    %c0_107 = arith.constant 0 : index
    %c0_108 = arith.constant 0 : index
    %203 = vector.load %arg5[%c0_107, %c0_108] : memref<8x128xf32, #tpu.memory_space<vmem>>, vector<8x128xf32>
    %204 = arith.addf %203, %202 : vector<8x128xf32>
    %cst_109 = arith.constant -2.560000e+02 : f32
    %cst_110 = arith.constant 2.560000e+02 : f32
    %205 = vector.broadcast %cst_109 : f32 to vector<8x128xf32>
    %206 = arith.maximumf %205, %204 : vector<8x128xf32>
    %207 = vector.broadcast %cst_110 : f32 to vector<8x128xf32>
    %208 = arith.minimumf %207, %206 : vector<8x128xf32>
    %cst_111 = arith.constant 2.000000e+00 : f32
    %209 = vector.broadcast %cst_111 : f32 to vector<8x128xf32>
    %210 = arith.cmpf ogt, %208, %209 : vector<8x128xf32>
    %211 = arith.extui %210 : vector<8x128xi1> to vector<8x128xi32>
    %212 = arith.sitofp %211 : vector<8x128xi32> to vector<8x128xf32>
    %213 = arith.index_cast %c6_i32 : i32 to index
    %c0_112 = arith.constant 0 : index
    %c0_113 = arith.constant 0 : index
    %214 = vector.load %arg4[%213, %c0_112, %c0_113] : memref<8x8x128xf32, #tpu.memory_space<vmem>>, vector<1x8x128xf32>
    %215 = vector.shape_cast %214 : vector<1x8x128xf32> to vector<8x128xf32>
    %216 = vector.shape_cast %212 : vector<8x128xf32> to vector<1x8x128xf32>
    tpu.vector_store %arg4[%213, %c0_112, %c0_113], %216 {strides = array<i32>} : memref<8x8x128xf32, #tpu.memory_space<vmem>>, vector<1x8x128xf32>,
    %217 = arith.extui %210 : vector<8x128xi1> to vector<8x128xi32>
    %218 = arith.sitofp %217 : vector<8x128xi32> to vector<8x128xf32>
    %cst_114 = arith.constant 2.000000e+00 : f32
    %219 = vector.broadcast %cst_114 : f32 to vector<8x128xf32>
    %220 = arith.mulf %218, %219 : vector<8x128xf32>
    %221 = arith.subf %208, %220 : vector<8x128xf32>
    %cst_115 = arith.constant -2.560000e+02 : f32
    %cst_116 = arith.constant 2.560000e+02 : f32
    %222 = vector.broadcast %cst_115 : f32 to vector<8x128xf32>
    %223 = arith.maximumf %222, %221 : vector<8x128xf32>
    %224 = vector.broadcast %cst_116 : f32 to vector<8x128xf32>
    %225 = arith.minimumf %224, %223 : vector<8x128xf32>
    %c0_117 = arith.constant 0 : index
    %c0_118 = arith.constant 0 : index
    %226 = vector.load %arg5[%c0_117, %c0_118] : memref<8x128xf32, #tpu.memory_space<vmem>>, vector<8x128xf32>
    tpu.vector_store %arg5[%c0_117, %c0_118], %225 {strides = array<i32>} : memref<8x128xf32, #tpu.memory_space<vmem>>, vector<8x128xf32>,
    %c7_i32 = arith.constant 7 : i32
    %227 = arith.index_cast %c7_i32 : i32 to index
    %c0_119 = arith.constant 0 : index
    %c0_120 = arith.constant 0 : index
    %c0_121 = arith.constant 0 : index
    %228 = vector.load %arg2[%227, %c0_119, %c0_120, %c0_121] : memref<8x2x8x128xi8, #tpu.memory_space<vmem>>, vector<1x2x8x128xi8>
    %229 = vector.shape_cast %228 : vector<1x2x8x128xi8> to vector<2x8x128xi8>
    %230 = arith.extsi %229 : vector<2x8x128xi8> to vector<2x8x128xi32>
    %cst_122 = arith.constant dense<0> : vector<8x128xi32>
    %231 = vector.multi_reduction <add>, %230, %cst_122 [0] : vector<2x8x128xi32> to vector<8x128xi32>
    %232 = arith.sitofp %231 : vector<8x128xi32> to vector<8x128xf32>
    %cst_123 = arith.constant 0.000000e+00 : f32
    %233 = vector.broadcast %cst_123 : f32 to vector<8x128xf32>
    %234 = arith.subf %232, %233 : vector<8x128xf32>
    %c0_124 = arith.constant 0 : index
    %c0_125 = arith.constant 0 : index
    %235 = vector.load %arg5[%c0_124, %c0_125] : memref<8x128xf32, #tpu.memory_space<vmem>>, vector<8x128xf32>
    %236 = arith.addf %235, %234 : vector<8x128xf32>
    %cst_126 = arith.constant -2.560000e+02 : f32
    %cst_127 = arith.constant 2.560000e+02 : f32
    %237 = vector.broadcast %cst_126 : f32 to vector<8x128xf32>
    %238 = arith.maximumf %237, %236 : vector<8x128xf32>
    %239 = vector.broadcast %cst_127 : f32 to vector<8x128xf32>
    %240 = arith.minimumf %239, %238 : vector<8x128xf32>
    %cst_128 = arith.constant 2.000000e+00 : f32
    %241 = vector.broadcast %cst_128 : f32 to vector<8x128xf32>
    %242 = arith.cmpf ogt, %240, %241 : vector<8x128xf32>
    %243 = arith.extui %242 : vector<8x128xi1> to vector<8x128xi32>
    %244 = arith.sitofp %243 : vector<8x128xi32> to vector<8x128xf32>
    %245 = arith.index_cast %c7_i32 : i32 to index
    %c0_129 = arith.constant 0 : index
    %c0_130 = arith.constant 0 : index
    %246 = vector.load %arg4[%245, %c0_129, %c0_130] : memref<8x8x128xf32, #tpu.memory_space<vmem>>, vector<1x8x128xf32>
    %247 = vector.shape_cast %246 : vector<1x8x128xf32> to vector<8x128xf32>
    %248 = vector.shape_cast %244 : vector<8x128xf32> to vector<1x8x128xf32>
    tpu.vector_store %arg4[%245, %c0_129, %c0_130], %248 {strides = array<i32>} : memref<8x8x128xf32, #tpu.memory_space<vmem>>, vector<1x8x128xf32>,
    %249 = arith.extui %242 : vector<8x128xi1> to vector<8x128xi32>
    %250 = arith.sitofp %249 : vector<8x128xi32> to vector<8x128xf32>
    %cst_131 = arith.constant 2.000000e+00 : f32
    %251 = vector.broadcast %cst_131 : f32 to vector<8x128xf32>
    %252 = arith.mulf %250, %251 : vector<8x128xf32>
    %253 = arith.subf %240, %252 : vector<8x128xf32>
    %cst_132 = arith.constant -2.560000e+02 : f32
    %cst_133 = arith.constant 2.560000e+02 : f32
    %254 = vector.broadcast %cst_132 : f32 to vector<8x128xf32>
    %255 = arith.maximumf %254, %253 : vector<8x128xf32>
    %256 = vector.broadcast %cst_133 : f32 to vector<8x128xf32>
    %257 = arith.minimumf %256, %255 : vector<8x128xf32>
    %c0_134 = arith.constant 0 : index
    %c0_135 = arith.constant 0 : index
    %258 = vector.load %arg5[%c0_134, %c0_135] : memref<8x128xf32, #tpu.memory_space<vmem>>, vector<8x128xf32>
    tpu.vector_store %arg5[%c0_134, %c0_135], %257 {strides = array<i32>} : memref<8x128xf32, #tpu.memory_space<vmem>>, vector<8x128xf32>,
    %c8_i32 = arith.constant 8 : i32
    return
  }
  func.func @transform_0(%arg0: i32, %arg1: i32) -> (i32, i32, i32, i32) {
    %c0_i32 = arith.constant 0 : i32
    %c0_i32_0 = arith.constant 0 : i32
    %c0_i32_1 = arith.constant 0 : i32
    return %arg1, %c0_i32, %arg0, %c0_i32_0 : i32, i32, i32, i32
  }
  func.func @transform_1(%arg0: i32, %arg1: i32) -> (i32, i32) {
    %c0_i32 = arith.constant 0 : i32
    %c0_i32_0 = arith.constant 0 : i32
    return %arg0, %c0_i32 : i32, i32
  }
  func.func @transform_2(%arg0: i32, %arg1: i32) -> (i32, i32, i32) {
    %c0_i32 = arith.constant 0 : i32
    %c0_i32_0 = arith.constant 0 : i32
    return %arg1, %arg0, %c0_i32 : i32, i32, i32
  }
  func.func @transform_3(%arg0: i32, %arg1: i32) -> (i32, i32) {
    %c0_i32 = arith.constant 0 : i32
    %c0_i32_0 = arith.constant 0 : i32
    return %arg0, %c0_i32 : i32, i32
  }
}

</mosaic_0001>

<bundles_post_ra>
// kernel: fsu_add_stream.1
= control target key start
LH: loop header
LB: loop body
LE: loop exit
PB: predicated region body
PF: predicated region fallthrough
CT: control target
= control target key end

     0   :  { %v278_v11 = vmov 0.0   ;;  %s349_s0 = inlined_call_operand.vmem [shape: s8[8,2,8,128], index: 0, kind: input, shape index: {}]   ;;  %s350_s1 = inlined_call_operand.vmem [shape: f32[8,128], index: 1, kind: input, shape index: {}, may-alias: {1,3}]   ;;  %s351_s2 = inlined_call_operand.vmem [shape: f32[8,8,128], index: 2, kind: output, shape index: {0}]   ;;  %s352_s3 = inlined_call_operand.vmem [shape: f32[8,128], index: 3, kind: output, shape index: {1}, may-alias: {1,3}]  }
   0x1   :  { %v239_v0 = vld [vmem:[%s349_s0] sm:$0xff]   ;;  %v271_v16 = vld [vmem:[%s349_s0 + $0x8] sm:$0xff]   ;;  %v273_v37 = vld [vmem:[%s349_s0 + $0x10] sm:$0xff]  }
   0x2   :  { %v240_v1 = vunpack.c.0.s8 %v239_v0  ;;  %v241_v2 = vunpack.c.1.s8 %v239_v0  ;;  %v17_v4 = vld [vmem:[%s350_s1] sm:$0xff]  ;;  %v244_v7 = vunpack.c.2.s8 %v239_v0  ;;  %v245_v8 = vunpack.c.3.s8 %v239_v0  ;;  %v275_v58 = vld [vmem:[%s349_s0 + $0x18] sm:$0xff]  }
   0x3   :  { %v248_v19 = vunpack.c.0.s8 %v271_v16  ;;  %v249_v20 = vunpack.c.1.s8 %v271_v16  ;;  %v252_v29 = vunpack.c.2.s8 %v271_v16  ;;  %v253_v30 = vunpack.c.3.s8 %v271_v16 }
   0x4   :  { %v23_v3 = vadd.s32 %v241_v2, %v240_v1  ;;  %v43_v10 = vadd.s32 %v245_v8, %v244_v7  ;;  %v256_v40 = vunpack.c.0.s8 %v273_v37  ;;  %v257_v41 = vunpack.c.1.s8 %v273_v37 }
   0x5   :  { %v64_v22 = vadd.s32 %v249_v20, %v248_v19  ;;  %v85_v32 = vadd.s32 %v253_v30, %v252_v29  ;;  %v260_v50 = vunpack.c.2.s8 %v273_v37  ;;  %v261_v51 = vunpack.c.3.s8 %v273_v37 }
   0x6   :  { %v24_v5 = vcvt.s32.f32 %v23_v3  ;;  %v44_v15 = vcvt.s32.f32 %v43_v10  ;;  %v106_v43 = vadd.s32 %v257_v41, %v256_v40  ;;  %v264_v61 = vunpack.c.0.s8 %v275_v58 }
   0x7   :  { %v65_v26 = vcvt.s32.f32 %v64_v22  ;;  %v86_v36 = vcvt.s32.f32 %v85_v32  ;;  %v127_v53 = vadd.s32 %v261_v51, %v260_v50  ;;  %v265_v62 = vunpack.c.1.s8 %v275_v58 }
   0x8   :  { %v26_v6 = vadd.f32 %v24_v5, %v17_v4  ;;  %v107_v47 = vcvt.s32.f32 %v106_v43  ;;  %v268_v7 = vunpack.c.2.s8 %v275_v58  ;;  %v269_v8 = vunpack.c.3.s8 %v275_v58 }
   0x9   :  { %v128_v57 = vcvt.s32.f32 %v127_v53  ;;  %v148_v0 = vadd.s32 %v265_v62, %v264_v61 }
   0xa   :  { %v193_v9 = vclamps-f32 %v26_v6, 256.0  ;;  %v169_v10 = vadd.s32 %v269_v8, %v268_v7 }
   0xb   :  { %v149_v4 = vcvt.s32.f32 %v148_v0 }
   0xc   :  { %vm29_vm0 = vcmp.gt.f32.partialorder %v193_v9, 2.0 }
   0xd   :  { %v194_v12 = vsel %vm29_vm0, 1.0, %v278_v11 }
   0xe   :  { %32 = vst [vmem:[%s351_s2] sm:$0xff] %v194_v12  ;;  %v33_v13 = vmul.f32 2.0, %v194_v12 }
  0x10   :  { %v34_v14 = vsub.f32 %v193_v9, %v33_v13 }
  0x12   :  { %v195_v17 = vclamps-f32 %v34_v14, 256.0 }
  0x14   :  { %v46_v18 = vadd.f32 %v195_v17, %v44_v15  ;;  %v170_v15 = vcvt.s32.f32 %v169_v10 }
  0x16   :  { %v198_v21 = vclamps-f32 %v46_v18, 256.0 }
  0x18   :  { %vm49_vm1 = vcmp.gt.f32.partialorder %v198_v21, 2.0 }
  0x19   :  { %v199_v23 = vsel %vm49_vm1, 1.0, %v278_v11 }
  0x1a   :  { %200 = vst [vmem:[%s351_s2 + $0x8] sm:$0xff] %v199_v23  ;;  %v54_v24 = vmul.f32 2.0, %v199_v23 }
  0x1c   :  { %v55_v25 = vsub.f32 %v198_v21, %v54_v24 }
  0x1e   :  { %v201_v27 = vclamps-f32 %v55_v25, 256.0 }
  0x20   :  { %v67_v28 = vadd.f32 %v201_v27, %v65_v26 }
  0x22   :  { %v204_v31 = vclamps-f32 %v67_v28, 256.0 }
  0x24   :  { %vm70_vm2 = vcmp.gt.f32.partialorder %v204_v31, 2.0 }
  0x25   :  { %v205_v33 = vsel %vm70_vm2, 1.0, %v278_v11 }
  0x26   :  { %206 = vst [vmem:[%s351_s2 + $0x10] sm:$0xff] %v205_v33  ;;  %v75_v34 = vmul.f32 2.0, %v205_v33 }
  0x28   :  { %v76_v35 = vsub.f32 %v204_v31, %v75_v34 }
  0x2a   :  { %v207_v38 = vclamps-f32 %v76_v35, 256.0 }
  0x2c   :  { %v88_v39 = vadd.f32 %v207_v38, %v86_v36 }
  0x2e   :  { %v210_v42 = vclamps-f32 %v88_v39, 256.0 }
  0x30   :  { %vm91_vm3 = vcmp.gt.f32.partialorder %v210_v42, 2.0 }
  0x31   :  { %v211_v44 = vsel %vm91_vm3, 1.0, %v278_v11 }
  0x32   :  { %212 = vst [vmem:[%s351_s2 + $0x18] sm:$0xff] %v211_v44  ;;  %v96_v45 = vmul.f32 2.0, %v211_v44 }
  0x34   :  { %v97_v46 = vsub.f32 %v210_v42, %v96_v45 }
  0x36   :  { %v213_v48 = vclamps-f32 %v97_v46, 256.0 }
  0x38   :  { %v109_v49 = vadd.f32 %v213_v48, %v107_v47 }
  0x3a   :  { %v216_v52 = vclamps-f32 %v109_v49, 256.0 }
  0x3c   :  { %vm112_vm4 = vcmp.gt.f32.partialorder %v216_v52, 2.0 }
  0x3d   :  { %v217_v54 = vsel %vm112_vm4, 1.0, %v278_v11 }
  0x3e   :  { %218 = vst [vmem:[%s351_s2 + $0x20] sm:$0xff] %v217_v54  ;;  %v117_v55 = vmul.f32 2.0, %v217_v54 }
  0x40   :  { %v118_v56 = vsub.f32 %v216_v52, %v117_v55 }
  0x42   :  { %v219_v59 = vclamps-f32 %v118_v56, 256.0 }
  0x44   :  { %v130_v60 = vadd.f32 %v219_v59, %v128_v57 }
  0x46   :  { %v222_v63 = vclamps-f32 %v130_v60, 256.0 }
  0x48   :  { %vm133_vm5 = vcmp.gt.f32.partialorder %v222_v63, 2.0 }
  0x49   :  { %v223_v1 = vsel %vm133_vm5, 1.0, %v278_v11 }
  0x4a   :  { %224 = vst [vmem:[%s351_s2 + $0x28] sm:$0xff] %v223_v1  ;;  %v138_v2 = vmul.f32 2.0, %v223_v1 }
  0x4c   :  { %v139_v3 = vsub.f32 %v222_v63, %v138_v2 }
  0x4e   :  { %v225_v5 = vclamps-f32 %v139_v3, 256.0 }
  0x50   :  { %v151_v6 = vadd.f32 %v225_v5, %v149_v4 }
  0x52   :  { %v228_v9 = vclamps-f32 %v151_v6, 256.0 }
  0x54   :  { %vm154_vm6 = vcmp.gt.f32.partialorder %v228_v9, 2.0 }
  0x55   :  { %v229_v12 = vsel %vm154_vm6, 1.0, %v278_v11 }
  0x56   :  { %230 = vst [vmem:[%s351_s2 + $0x30] sm:$0xff] %v229_v12  ;;  %v159_v13 = vmul.f32 2.0, %v229_v12 }
  0x58   :  { %v160_v14 = vsub.f32 %v228_v9, %v159_v13 }
  0x5a   :  { %v231_v16 = vclamps-f32 %v160_v14, 256.0 }
  0x5c   :  { %v172_v17 = vadd.f32 %v231_v16, %v170_v15 }
  0x5e   :  { %v234_v18 = vclamps-f32 %v172_v17, 256.0 }
  0x60   :  { %vm175_vm7 = vcmp.gt.f32.partialorder %v234_v18, 2.0 }
  0x61   :  { %v235_v19 = vsel %vm175_vm7, 1.0, %v278_v11 }
  0x62   :  { %236 = vst [vmem:[%s351_s2 + $0x38] sm:$0xff] %v235_v19  ;;  %v180_v20 = vmul.f32 2.0, %v235_v19 }
  0x64   :  { %v181_v21 = vsub.f32 %v234_v18, %v180_v20 }
  0x66   :  { %v237_v22 = vclamps-f32 %v181_v21, 256.0 }
  0x68   :  { %184 = vst [vmem:[%s352_s3] sm:$0xff] %v237_v22 }

</bundles_post_ra>
